<compile_context>
chip_gen: v7x
topology: tpu7x:2x2x1
jax: 0.10.0
libtpu: 0.0.40
codegen_flags: <defaults>
</compile_context>

<pallas_src>
import functools

import jax
import jax.numpy as jnp
import numpy as np
from jax.experimental import pallas as pl
from jax.experimental.pallas import tpu as pltpu


def lstm_kernel(
    x_ref,        # (T*B, D)   bf16, flattened (padded-batch) input
    wcat_ref,     # (D, 4H)    bf16, [wf.T | wi.T | wo.T | wc.T]
    bcat_ref,     # (1, 4H)    f32,  [bf | bi | bo | bc]
    ucat_ref,     # (H, 4H)    bf16, [uf.T | ui.T | uo.T | uc.T]
    h_out_ref,    # (T*B, H)   f32, output hidden states (row-major over T then B)
    *, T, B, H,
):
    H4 = 4 * H

    # ---- fused input projection: one lane-dense (T*B, 4H=128) bf16 MXU matmul.
    # Result (T*B=64, 128) f32 = 8 vregs; kept live instead of a VMEM scratch.
    p_all = jnp.dot(x_ref[...], wcat_ref[...],
                    preferred_element_type=jnp.float32) + bcat_ref[...]

    # Recurrent weight (32x128 bf16) loaded into vregs once, reused every step.
    # TODO(synk): optionally stage it in the MXU across steps with
    # pltpu.matmul_push_rhs/matmul_acc_lhs once confirmed Mosaic re-pushes it.
    ucat = ucat_ref[...]

    h = jnp.zeros((B, H), jnp.float32)
    c = jnp.zeros((B, H), jnp.float32)
    hs = []

    # Fully unrolled static Python loop (T small & static): static, tile-aligned
    # slices of p_all and full scheduler visibility across adjacent steps.
    for k in range(T):
        # Single fused recurrent matmul on the critical path:
        # (B, H) bf16 @ (H, 4H=128) bf16 -> (B, 128) f32.  Gate order: [f,i,o,c].
        z = p_all[k * B:(k + 1) * B] + jnp.dot(
            h.astype(jnp.bfloat16), ucat, preferred_element_type=jnp.float32)
        # sigmoid via tanh: one EUP push on the full 128-lane slab + VPU fixup.
        sig = 0.5 * (jnp.tanh(0.5 * z) + 1.0)
        f = sig[:, 0:H]
        i = sig[:, H:2 * H]
        o = sig[:, 2 * H:3 * H]
        g = jnp.tanh(z[:, 3 * H:])
        c = i * g + f * c                 # drop_mask == 1.0 (eval mode, drop=0)
        h = o * jnp.tanh(c)
        hs.append(h)                      # kept in vregs; stored after the loop

    # One dense store instead of T masked per-step stores on the critical path.
    h_out_ref[...] = jnp.concatenate(hs, axis=0)


def lstm_forward(x, params):
    """x: (T, B, D) float32.  Returns (T, B, H) float32."""
    T, B, D = x.shape
    H = params["wf"].shape[0]

    # Pre-transpose + pre-concatenate + bf16-cast the weights once, outside.
    wcat = jnp.concatenate([params["wf"].T, params["wi"].T,
                            params["wo"].T, params["wc"].T],
                           axis=1).astype(jnp.bfloat16)                # (D, 4H)
    bcat = jnp.concatenate([params["bf"], params["bi"],
                            params["bo"], params["bc"]], axis=1)       # (1, 4H) f32
    ucat = jnp.concatenate([params["uf"].T, params["ui"].T,
                            params["uo"].T, params["uc"].T],
                           axis=1).astype(jnp.bfloat16)                # (H, 4H)

    # Pad batch to a full sublane tile (multiple of 8): tile-aligned per-step
    # gate slices and fully-used MXU LHS rows. Padded rows are sliced off below.
    Bp = ((B + 7) // 8) * 8
    if Bp != B:
        x = jnp.pad(x, ((0, 0), (0, Bp - B), (0, 0)))
    x_flat = x.reshape(T * Bp, D).astype(jnp.bfloat16)

    vmem = pl.BlockSpec(memory_space=pltpu.MemorySpace.VMEM)
    h_flat = pl.pallas_call(
        functools.partial(lstm_kernel, T=T, B=Bp, H=H),
        out_shape=jax.ShapeDtypeStruct((T * Bp, H), jnp.float32),
        in_specs=[vmem, vmem, vmem, vmem],
        out_specs=vmem,
    )(x_flat, wcat, bcat, ucat)

    return h_flat.reshape(T, Bp, H)[:, :B, :]


def lstm_reference(x, params):
    """Pure-JAX f32 reference mirroring the PyTorch forward (eval mode, drop=0)."""
    T, B, D = x.shape
    H = params["wf"].shape[0]
    pf = jnp.einsum("tbd,hd->tbh", x, params["wf"]) + params["bf"]
    pi = jnp.einsum("tbd,hd->tbh", x, params["wi"]) + params["bi"]
    po = jnp.einsum("tbd,hd->tbh", x, params["wo"]) + params["bo"]
    pc = jnp.einsum("tbd,hd->tbh", x, params["wc"]) + params["bc"]

    def step(carry, gates):
        ht, ct = carry
        gf, gi, go, gc = gates
        ft = jax.nn.sigmoid(gf + ht @ params["uf"].T)
        it = jax.nn.sigmoid(gi + ht @ params["ui"].T)
        ot = jax.nn.sigmoid(go + ht @ params["uo"].T)
        ct = it * jnp.tanh(gc + ht @ params["uc"].T) + ft * ct
        ht = ot * jnp.tanh(ct)
        return (ht, ct), ht

    init = (jnp.zeros((B, H), jnp.float32), jnp.zeros((B, H), jnp.float32))
    _, hs = jax.lax.scan(step, init, (pf, pi, po, pc))
    return hs


if __name__ == "__main__":
    T, B, D, H = 8, 4, 16, 32

    key = jax.random.PRNGKey(0)
    ks = jax.random.split(key, 16)

    def init_w(k, shape, scale=0.1):
        return (scale * jax.random.normal(k, shape)).astype(jnp.float32)

    params = {
        "wf": init_w(ks[0], (H, D)), "wi": init_w(ks[1], (H, D)),
        "wo": init_w(ks[2], (H, D)), "wc": init_w(ks[3], (H, D)),
        "bf": init_w(ks[4], (1, H)), "bi": init_w(ks[5], (1, H)),
        "bo": init_w(ks[6], (1, H)), "bc": init_w(ks[7], (1, H)),
        "uf": init_w(ks[8], (H, H)), "ui": init_w(ks[9], (H, H)),
        "uo": init_w(ks[10], (H, H)), "uc": init_w(ks[11], (H, H)),
    }

    x = jax.random.normal(ks[12], (T, B, D), dtype=jnp.float32)

    out = jax.block_until_ready(lstm_forward(x, params))
    ref = jax.block_until_ready(lstm_reference(x, params))
    # bf16 MXU operands -> relaxed tolerance vs. the f32 reference.
    np.testing.assert_allclose(np.asarray(out), np.asarray(ref),
                               atol=2e-2, rtol=2e-2)

    print("KERNEL_OK")
</pallas_src>

<mosaic_0001>
module attributes {stable_mosaic.version = 11 : i64} {
  func.func @lstm_kernel(%arg0: memref<64x16xbf16, #tpu.memory_space<vmem>>, %arg1: memref<16x128xbf16, #tpu.memory_space<vmem>>, %arg2: memref<1x128xf32, #tpu.memory_space<vmem>>, %arg3: memref<32x128xbf16, #tpu.memory_space<vmem>>, %arg4: memref<64x32xf32, #tpu.memory_space<vmem>>) attributes {dimension_semantics = [], scalar_prefetch = 0 : i64, scratch_operands = 0 : i64, tpu.core_type = #tpu.core_type<tc>} {
    %c0 = arith.constant 0 : index
    %c0_0 = arith.constant 0 : index
    %0 = vector.load %arg0[%c0, %c0_0] : memref<64x16xbf16, #tpu.memory_space<vmem>>, vector<64x16xbf16>
    %c0_1 = arith.constant 0 : index
    %c0_2 = arith.constant 0 : index
    %1 = vector.load %arg1[%c0_1, %c0_2] : memref<16x128xbf16, #tpu.memory_space<vmem>>, vector<16x128xbf16>
    %cst = arith.constant dense<0.000000e+00> : vector<64x128xf32>
    %2 = tpu.matmul %0, %1, %cst {dimension_numbers = #tpu.dot_dimension_numbers<[1], [0], [0], [1], [0, 0, 1, 1], [], []>} : vector<64x16xbf16>, vector<16x128xbf16>, vector<64x128xf32> -> vector<64x128xf32>
    %c0_3 = arith.constant 0 : index
    %c0_4 = arith.constant 0 : index
    %3 = vector.load %arg2[%c0_3, %c0_4] : memref<1x128xf32, #tpu.memory_space<vmem>>, vector<1x128xf32>
    %4 = vector.broadcast %3 : vector<1x128xf32> to vector<64x128xf32>
    %5 = arith.addf %2, %4 : vector<64x128xf32>
    %c0_5 = arith.constant 0 : index
    %c0_6 = arith.constant 0 : index
    %6 = vector.load %arg3[%c0_5, %c0_6] : memref<32x128xbf16, #tpu.memory_space<vmem>>, vector<32x128xbf16>
    %cst_7 = arith.constant 0.000000e+00 : f32
    %7 = vector.broadcast %cst_7 : f32 to vector<8x32xf32>
    %cst_8 = arith.constant 0.000000e+00 : f32
    %8 = vector.broadcast %cst_8 : f32 to vector<8x32xf32>
    %9 = vector.extract_strided_slice %5 {offsets = [0, 0], sizes = [8, 128], strides = [1, 1]} : vector<64x128xf32> to vector<8x128xf32>
    %10 = arith.truncf %7 : vector<8x32xf32> to vector<8x32xbf16>
    %cst_9 = arith.constant dense<0.000000e+00> : vector<8x128xf32>
    %11 = tpu.matmul %10, %6, %cst_9 {dimension_numbers = #tpu.dot_dimension_numbers<[1], [0], [0], [1], [0, 0, 1, 1], [], []>} : vector<8x32xbf16>, vector<32x128xbf16>, vector<8x128xf32> -> vector<8x128xf32>
    %12 = arith.addf %9, %11 : vector<8x128xf32>
    %cst_10 = arith.constant 5.000000e-01 : f32
    %13 = vector.broadcast %cst_10 : f32 to vector<8x128xf32>
    %14 = arith.mulf %13, %12 : vector<8x128xf32>
    %15 = math.tanh %14 : vector<8x128xf32>
    %cst_11 = arith.constant 1.000000e+00 : f32
    %16 = vector.broadcast %cst_11 : f32 to vector<8x128xf32>
    %17 = arith.addf %15, %16 : vector<8x128xf32>
    %cst_12 = arith.constant 5.000000e-01 : f32
    %18 = vector.broadcast %cst_12 : f32 to vector<8x128xf32>
    %19 = arith.mulf %18, %17 : vector<8x128xf32>
    %20 = vector.extract_strided_slice %19 {offsets = [0, 0], sizes = [8, 32], strides = [1, 1]} : vector<8x128xf32> to vector<8x32xf32>
    %21 = vector.extract_strided_slice %19 {offsets = [0, 32], sizes = [8, 32], strides = [1, 1]} : vector<8x128xf32> to vector<8x32xf32>
    %22 = vector.extract_strided_slice %19 {offsets = [0, 64], sizes = [8, 32], strides = [1, 1]} : vector<8x128xf32> to vector<8x32xf32>
    %23 = vector.extract_strided_slice %12 {offsets = [0, 96], sizes = [8, 32], strides = [1, 1]} : vector<8x128xf32> to vector<8x32xf32>
    %24 = math.tanh %23 : vector<8x32xf32>
    %25 = arith.mulf %21, %24 : vector<8x32xf32>
    %26 = arith.mulf %20, %8 : vector<8x32xf32>
    %27 = arith.addf %25, %26 : vector<8x32xf32>
    %28 = math.tanh %27 : vector<8x32xf32>
    %29 = arith.mulf %22, %28 : vector<8x32xf32>
    %30 = vector.extract_strided_slice %5 {offsets = [8, 0], sizes = [8, 128], strides = [1, 1]} : vector<64x128xf32> to vector<8x128xf32>
    %31 = arith.truncf %29 : vector<8x32xf32> to vector<8x32xbf16>
    %cst_13 = arith.constant dense<0.000000e+00> : vector<8x128xf32>
    %32 = tpu.matmul %31, %6, %cst_13 {dimension_numbers = #tpu.dot_dimension_numbers<[1], [0], [0], [1], [0, 0, 1, 1], [], []>} : vector<8x32xbf16>, vector<32x128xbf16>, vector<8x128xf32> -> vector<8x128xf32>
    %33 = arith.addf %30, %32 : vector<8x128xf32>
    %cst_14 = arith.constant 5.000000e-01 : f32
    %34 = vector.broadcast %cst_14 : f32 to vector<8x128xf32>
    %35 = arith.mulf %34, %33 : vector<8x128xf32>
    %36 = math.tanh %35 : vector<8x128xf32>
    %cst_15 = arith.constant 1.000000e+00 : f32
    %37 = vector.broadcast %cst_15 : f32 to vector<8x128xf32>
    %38 = arith.addf %36, %37 : vector<8x128xf32>
    %cst_16 = arith.constant 5.000000e-01 : f32
    %39 = vector.broadcast %cst_16 : f32 to vector<8x128xf32>
    %40 = arith.mulf %39, %38 : vector<8x128xf32>
    %41 = vector.extract_strided_slice %40 {offsets = [0, 0], sizes = [8, 32], strides = [1, 1]} : vector<8x128xf32> to vector<8x32xf32>
    %42 = vector.extract_strided_slice %40 {offsets = [0, 32], sizes = [8, 32], strides = [1, 1]} : vector<8x128xf32> to vector<8x32xf32>
    %43 = vector.extract_strided_slice %40 {offsets = [0, 64], sizes = [8, 32], strides = [1, 1]} : vector<8x128xf32> to vector<8x32xf32>
    %44 = vector.extract_strided_slice %33 {offsets = [0, 96], sizes = [8, 32], strides = [1, 1]} : vector<8x128xf32> to vector<8x32xf32>
    %45 = math.tanh %44 : vector<8x32xf32>
    %46 = arith.mulf %42, %45 : vector<8x32xf32>
    %47 = arith.mulf %41, %27 : vector<8x32xf32>
    %48 = arith.addf %46, %47 : vector<8x32xf32>
    %49 = math.tanh %48 : vector<8x32xf32>
    %50 = arith.mulf %43, %49 : vector<8x32xf32>
    %51 = vector.extract_strided_slice %5 {offsets = [16, 0], sizes = [8, 128], strides = [1, 1]} : vector<64x128xf32> to vector<8x128xf32>
    %52 = arith.truncf %50 : vector<8x32xf32> to vector<8x32xbf16>
    %cst_17 = arith.constant dense<0.000000e+00> : vector<8x128xf32>
    %53 = tpu.matmul %52, %6, %cst_17 {dimension_numbers = #tpu.dot_dimension_numbers<[1], [0], [0], [1], [0, 0, 1, 1], [], []>} : vector<8x32xbf16>, vector<32x128xbf16>, vector<8x128xf32> -> vector<8x128xf32>
    %54 = arith.addf %51, %53 : vector<8x128xf32>
    %cst_18 = arith.constant 5.000000e-01 : f32
    %55 = vector.broadcast %cst_18 : f32 to vector<8x128xf32>
    %56 = arith.mulf %55, %54 : vector<8x128xf32>
    %57 = math.tanh %56 : vector<8x128xf32>
    %cst_19 = arith.constant 1.000000e+00 : f32
    %58 = vector.broadcast %cst_19 : f32 to vector<8x128xf32>
    %59 = arith.addf %57, %58 : vector<8x128xf32>
    %cst_20 = arith.constant 5.000000e-01 : f32
    %60 = vector.broadcast %cst_20 : f32 to vector<8x128xf32>
    %61 = arith.mulf %60, %59 : vector<8x128xf32>
    %62 = vector.extract_strided_slice %61 {offsets = [0, 0], sizes = [8, 32], strides = [1, 1]} : vector<8x128xf32> to vector<8x32xf32>
    %63 = vector.extract_strided_slice %61 {offsets = [0, 32], sizes = [8, 32], strides = [1, 1]} : vector<8x128xf32> to vector<8x32xf32>
    %64 = vector.extract_strided_slice %61 {offsets = [0, 64], sizes = [8, 32], strides = [1, 1]} : vector<8x128xf32> to vector<8x32xf32>
    %65 = vector.extract_strided_slice %54 {offsets = [0, 96], sizes = [8, 32], strides = [1, 1]} : vector<8x128xf32> to vector<8x32xf32>
    %66 = math.tanh %65 : vector<8x32xf32>
    %67 = arith.mulf %63, %66 : vector<8x32xf32>
    %68 = arith.mulf %62, %48 : vector<8x32xf32>
    %69 = arith.addf %67, %68 : vector<8x32xf32>
    %70 = math.tanh %69 : vector<8x32xf32>
    %71 = arith.mulf %64, %70 : vector<8x32xf32>
    %72 = vector.extract_strided_slice %5 {offsets = [24, 0], sizes = [8, 128], strides = [1, 1]} : vector<64x128xf32> to vector<8x128xf32>
    %73 = arith.truncf %71 : vector<8x32xf32> to vector<8x32xbf16>
    %cst_21 = arith.constant dense<0.000000e+00> : vector<8x128xf32>
    %74 = tpu.matmul %73, %6, %cst_21 {dimension_numbers = #tpu.dot_dimension_numbers<[1], [0], [0], [1], [0, 0, 1, 1], [], []>} : vector<8x32xbf16>, vector<32x128xbf16>, vector<8x128xf32> -> vector<8x128xf32>
    %75 = arith.addf %72, %74 : vector<8x128xf32>
    %cst_22 = arith.constant 5.000000e-01 : f32
    %76 = vector.broadcast %cst_22 : f32 to vector<8x128xf32>
    %77 = arith.mulf %76, %75 : vector<8x128xf32>
    %78 = math.tanh %77 : vector<8x128xf32>
    %cst_23 = arith.constant 1.000000e+00 : f32
    %79 = vector.broadcast %cst_23 : f32 to vector<8x128xf32>
    %80 = arith.addf %78, %79 : vector<8x128xf32>
    %cst_24 = arith.constant 5.000000e-01 : f32
    %81 = vector.broadcast %cst_24 : f32 to vector<8x128xf32>
    %82 = arith.mulf %81, %80 : vector<8x128xf32>
    %83 = vector.extract_strided_slice %82 {offsets = [0, 0], sizes = [8, 32], strides = [1, 1]} : vector<8x128xf32> to vector<8x32xf32>
    %84 = vector.extract_strided_slice %82 {offsets = [0, 32], sizes = [8, 32], strides = [1, 1]} : vector<8x128xf32> to vector<8x32xf32>
    %85 = vector.extract_strided_slice %82 {offsets = [0, 64], sizes = [8, 32], strides = [1, 1]} : vector<8x128xf32> to vector<8x32xf32>
    %86 = vector.extract_strided_slice %75 {offsets = [0, 96], sizes = [8, 32], strides = [1, 1]} : vector<8x128xf32> to vector<8x32xf32>
    %87 = math.tanh %86 : vector<8x32xf32>
    %88 = arith.mulf %84, %87 : vector<8x32xf32>
    %89 = arith.mulf %83, %69 : vector<8x32xf32>
    %90 = arith.addf %88, %89 : vector<8x32xf32>
    %91 = math.tanh %90 : vector<8x32xf32>
    %92 = arith.mulf %85, %91 : vector<8x32xf32>
    %93 = vector.extract_strided_slice %5 {offsets = [32, 0], sizes = [8, 128], strides = [1, 1]} : vector<64x128xf32> to vector<8x128xf32>
    %94 = arith.truncf %92 : vector<8x32xf32> to vector<8x32xbf16>
    %cst_25 = arith.constant dense<0.000000e+00> : vector<8x128xf32>
    %95 = tpu.matmul %94, %6, %cst_25 {dimension_numbers = #tpu.dot_dimension_numbers<[1], [0], [0], [1], [0, 0, 1, 1], [], []>} : vector<8x32xbf16>, vector<32x128xbf16>, vector<8x128xf32> -> vector<8x128xf32>
    %96 = arith.addf %93, %95 : vector<8x128xf32>
    %cst_26 = arith.constant 5.000000e-01 : f32
    %97 = vector.broadcast %cst_26 : f32 to vector<8x128xf32>
    %98 = arith.mulf %97, %96 : vector<8x128xf32>
    %99 = math.tanh %98 : vector<8x128xf32>
    %cst_27 = arith.constant 1.000000e+00 : f32
    %100 = vector.broadcast %cst_27 : f32 to vector<8x128xf32>
    %101 = arith.addf %99, %100 : vector<8x128xf32>
    %cst_28 = arith.constant 5.000000e-01 : f32
    %102 = vector.broadcast %cst_28 : f32 to vector<8x128xf32>
    %103 = arith.mulf %102, %101 : vector<8x128xf32>
    %104 = vector.extract_strided_slice %103 {offsets = [0, 0], sizes = [8, 32], strides = [1, 1]} : vector<8x128xf32> to vector<8x32xf32>
    %105 = vector.extract_strided_slice %103 {offsets = [0, 32], sizes = [8, 32], strides = [1, 1]} : vector<8x128xf32> to vector<8x32xf32>
    %106 = vector.extract_strided_slice %103 {offsets = [0, 64], sizes = [8, 32], strides = [1, 1]} : vector<8x128xf32> to vector<8x32xf32>
    %107 = vector.extract_strided_slice %96 {offsets = [0, 96], sizes = [8, 32], strides = [1, 1]} : vector<8x128xf32> to vector<8x32xf32>
    %108 = math.tanh %107 : vector<8x32xf32>
    %109 = arith.mulf %105, %108 : vector<8x32xf32>
    %110 = arith.mulf %104, %90 : vector<8x32xf32>
    %111 = arith.addf %109, %110 : vector<8x32xf32>
    %112 = math.tanh %111 : vector<8x32xf32>
    %113 = arith.mulf %106, %112 : vector<8x32xf32>
    %114 = vector.extract_strided_slice %5 {offsets = [40, 0], sizes = [8, 128], strides = [1, 1]} : vector<64x128xf32> to vector<8x128xf32>
    %115 = arith.truncf %113 : vector<8x32xf32> to vector<8x32xbf16>
    %cst_29 = arith.constant dense<0.000000e+00> : vector<8x128xf32>
    %116 = tpu.matmul %115, %6, %cst_29 {dimension_numbers = #tpu.dot_dimension_numbers<[1], [0], [0], [1], [0, 0, 1, 1], [], []>} : vector<8x32xbf16>, vector<32x128xbf16>, vector<8x128xf32> -> vector<8x128xf32>
    %117 = arith.addf %114, %116 : vector<8x128xf32>
    %cst_30 = arith.constant 5.000000e-01 : f32
    %118 = vector.broadcast %cst_30 : f32 to vector<8x128xf32>
    %119 = arith.mulf %118, %117 : vector<8x128xf32>
    %120 = math.tanh %119 : vector<8x128xf32>
    %cst_31 = arith.constant 1.000000e+00 : f32
    %121 = vector.broadcast %cst_31 : f32 to vector<8x128xf32>
    %122 = arith.addf %120, %121 : vector<8x128xf32>
    %cst_32 = arith.constant 5.000000e-01 : f32
    %123 = vector.broadcast %cst_32 : f32 to vector<8x128xf32>
    %124 = arith.mulf %123, %122 : vector<8x128xf32>
    %125 = vector.extract_strided_slice %124 {offsets = [0, 0], sizes = [8, 32], strides = [1, 1]} : vector<8x128xf32> to vector<8x32xf32>
    %126 = vector.extract_strided_slice %124 {offsets = [0, 32], sizes = [8, 32], strides = [1, 1]} : vector<8x128xf32> to vector<8x32xf32>
    %127 = vector.extract_strided_slice %124 {offsets = [0, 64], sizes = [8, 32], strides = [1, 1]} : vector<8x128xf32> to vector<8x32xf32>
    %128 = vector.extract_strided_slice %117 {offsets = [0, 96], sizes = [8, 32], strides = [1, 1]} : vector<8x128xf32> to vector<8x32xf32>
    %129 = math.tanh %128 : vector<8x32xf32>
    %130 = arith.mulf %126, %129 : vector<8x32xf32>
    %131 = arith.mulf %125, %111 : vector<8x32xf32>
    %132 = arith.addf %130, %131 : vector<8x32xf32>
    %133 = math.tanh %132 : vector<8x32xf32>
    %134 = arith.mulf %127, %133 : vector<8x32xf32>
    %135 = vector.extract_strided_slice %5 {offsets = [48, 0], sizes = [8, 128], strides = [1, 1]} : vector<64x128xf32> to vector<8x128xf32>
    %136 = arith.truncf %134 : vector<8x32xf32> to vector<8x32xbf16>
    %cst_33 = arith.constant dense<0.000000e+00> : vector<8x128xf32>
    %137 = tpu.matmul %136, %6, %cst_33 {dimension_numbers = #tpu.dot_dimension_numbers<[1], [0], [0], [1], [0, 0, 1, 1], [], []>} : vector<8x32xbf16>, vector<32x128xbf16>, vector<8x128xf32> -> vector<8x128xf32>
    %138 = arith.addf %135, %137 : vector<8x128xf32>
    %cst_34 = arith.constant 5.000000e-01 : f32
    %139 = vector.broadcast %cst_34 : f32 to vector<8x128xf32>
    %140 = arith.mulf %139, %138 : vector<8x128xf32>
    %141 = math.tanh %140 : vector<8x128xf32>
    %cst_35 = arith.constant 1.000000e+00 : f32
    %142 = vector.broadcast %cst_35 : f32 to vector<8x128xf32>
    %143 = arith.addf %141, %142 : vector<8x128xf32>
    %cst_36 = arith.constant 5.000000e-01 : f32
    %144 = vector.broadcast %cst_36 : f32 to vector<8x128xf32>
    %145 = arith.mulf %144, %143 : vector<8x128xf32>
    %146 = vector.extract_strided_slice %145 {offsets = [0, 0], sizes = [8, 32], strides = [1, 1]} : vector<8x128xf32> to vector<8x32xf32>
    %147 = vector.extract_strided_slice %145 {offsets = [0, 32], sizes = [8, 32], strides = [1, 1]} : vector<8x128xf32> to vector<8x32xf32>
    %148 = vector.extract_strided_slice %145 {offsets = [0, 64], sizes = [8, 32], strides = [1, 1]} : vector<8x128xf32> to vector<8x32xf32>
    %149 = vector.extract_strided_slice %138 {offsets = [0, 96], sizes = [8, 32], strides = [1, 1]} : vector<8x128xf32> to vector<8x32xf32>
    %150 = math.tanh %149 : vector<8x32xf32>
    %151 = arith.mulf %147, %150 : vector<8x32xf32>
    %152 = arith.mulf %146, %132 : vector<8x32xf32>
    %153 = arith.addf %151, %152 : vector<8x32xf32>
    %154 = math.tanh %153 : vector<8x32xf32>
    %155 = arith.mulf %148, %154 : vector<8x32xf32>
    %156 = vector.extract_strided_slice %5 {offsets = [56, 0], sizes = [8, 128], strides = [1, 1]} : vector<64x128xf32> to vector<8x128xf32>
    %157 = arith.truncf %155 : vector<8x32xf32> to vector<8x32xbf16>
    %cst_37 = arith.constant dense<0.000000e+00> : vector<8x128xf32>
    %158 = tpu.matmul %157, %6, %cst_37 {dimension_numbers = #tpu.dot_dimension_numbers<[1], [0], [0], [1], [0, 0, 1, 1], [], []>} : vector<8x32xbf16>, vector<32x128xbf16>, vector<8x128xf32> -> vector<8x128xf32>
    %159 = arith.addf %156, %158 : vector<8x128xf32>
    %cst_38 = arith.constant 5.000000e-01 : f32
    %160 = vector.broadcast %cst_38 : f32 to vector<8x128xf32>
    %161 = arith.mulf %160, %159 : vector<8x128xf32>
    %162 = math.tanh %161 : vector<8x128xf32>
    %cst_39 = arith.constant 1.000000e+00 : f32
    %163 = vector.broadcast %cst_39 : f32 to vector<8x128xf32>
    %164 = arith.addf %162, %163 : vector<8x128xf32>
    %cst_40 = arith.constant 5.000000e-01 : f32
    %165 = vector.broadcast %cst_40 : f32 to vector<8x128xf32>
    %166 = arith.mulf %165, %164 : vector<8x128xf32>
    %167 = vector.extract_strided_slice %166 {offsets = [0, 0], sizes = [8, 32], strides = [1, 1]} : vector<8x128xf32> to vector<8x32xf32>
    %168 = vector.extract_strided_slice %166 {offsets = [0, 32], sizes = [8, 32], strides = [1, 1]} : vector<8x128xf32> to vector<8x32xf32>
    %169 = vector.extract_strided_slice %166 {offsets = [0, 64], sizes = [8, 32], strides = [1, 1]} : vector<8x128xf32> to vector<8x32xf32>
    %170 = vector.extract_strided_slice %159 {offsets = [0, 96], sizes = [8, 32], strides = [1, 1]} : vector<8x128xf32> to vector<8x32xf32>
    %171 = math.tanh %170 : vector<8x32xf32>
    %172 = arith.mulf %168, %171 : vector<8x32xf32>
    %173 = arith.mulf %167, %153 : vector<8x32xf32>
    %174 = arith.addf %172, %173 : vector<8x32xf32>
    %175 = math.tanh %174 : vector<8x32xf32>
    %176 = arith.mulf %169, %175 : vector<8x32xf32>
    %177 = tpu.concatenate %29, %50, %71, %92, %113, %134, %155, %176 in 0 : vector<8x32xf32>, vector<8x32xf32>, vector<8x32xf32>, vector<8x32xf32>, vector<8x32xf32>, vector<8x32xf32>, vector<8x32xf32>, vector<8x32xf32> -> vector<64x32xf32>
    %c0_41 = arith.constant 0 : index
    %c0_42 = arith.constant 0 : index
    %178 = vector.load %arg4[%c0_41, %c0_42] : memref<64x32xf32, #tpu.memory_space<vmem>>, vector<64x32xf32>
    tpu.vector_store %arg4[%c0_41, %c0_42], %177 {strides = array<i32>} : memref<64x32xf32, #tpu.memory_space<vmem>>, vector<64x32xf32>,
    return
  }
}

</mosaic_0001>

<bundles_post_ra>
// kernel: tpu_custom_call.1
= control target key start
LH: loop header
LB: loop body
LE: loop exit
PB: predicated region body
PF: predicated region fallthrough
CT: control target
= control target key end

     0   :  { %v967_v0 = vmov 0.0   ;;  %vm968_vm0 = vmmov 0   ;;  %vm61_vm1 = vcmask 130048   ;;  %v969_v6 = vmov 0   ;;  %s970_s25 = smov 64   ;;  %s972_s26 = smov 96   ;;  %s1221_s1 = inlined_call_operand.vmem [shape: bf16[16,128], index: 1, kind: input, shape index: {}]   ;;  %s1222_s3 = inlined_call_operand.vmem [shape: bf16[32,128], index: 3, kind: input, shape index: {}]   ;;  %s1223_s0 = inlined_call_operand.vmem [shape: bf16[64,16], index: 0, kind: input, shape index: {}]   ;;  %s1224_s2 = inlined_call_operand.vmem [shape: f32[1,128], index: 2, kind: input, shape index: {}]   ;;  %s1225_s4 = inlined_call_operand.vmem [shape: f32[64,32], index: 4, kind: output, shape index: {}]  }
   0x1   :  { %842 = vmatprep.subr.bf16.mxu1 %v967_v0  ;;  %v912_v1 = vld [vmem:[%s1221_s1] sm:$0xff]   ;;  %846 = vmatprep.mubr.msk.bf16.mxu1 %vm968_vm0, %v967_v0  ;;  %v915_v4 = vld [vmem:[%s1223_s0 + $0x8] sm:$0xff]   ;;  %vm155_vm2 = vcmask 261120   ;;  %v917_v50 = vld [vmem:[%s1223_s0 + $0x10] sm:$0xff]  }
   0x2   :  { %v1007_v2 = vld [vmem:[%s1222_s3] sm:$0xff]   ;;  %832 = vmatprep.subr.bf16.mxu0 %v912_v1  ;;  %v1021_v5 = vld [vmem:[%s1222_s3 + $0x8] sm:$0xff]   ;;  %v918_v51 = vld [vmem:[%s1223_s0 + $0x18] sm:$0xff]  }
   0x3   :  { %v914_v3 = vld [vmem:[%s1223_s0] sm:$0xff]   ;;  %843 = vmatpush3.bf16.msra.mxu1 %v1007_v2  ;;  %833 = vmatpush3.bf16.msra.mxu0 %v912_v1 }
   0x4   :  { %834 = vmatprep.mubr.msk.bf16.mxu0 %vm61_vm1, %v914_v3  ;;  %844 = vmatprep.subr.bf16.mxu1 %v967_v0  ;;  %v1040_v7 = vld [vmem:[%s1224_s2] ss:$0 sm:$0xff]  ;;  %s971_s2 = smov 32  }
   0x5   :  { %858 = vmatprep.subr.bf16.mxu0 %v967_v0 }
   0x6   :  { %835 = vmatmul.mubr.msk.bf16.vlgmr.msra.gmra.mrb[0].mxu0 %vm61_vm1, %v915_v4 }
   0x7   :  { %845 = vmatpush3.bf16.msra.mxu1 %v1021_v5  ;;  %859 = vmatpush3.bf16.msra.mxu0 %v1007_v2 }
   0x8   :  { %850 = vmatprep.subr.bf16.mxu1 %v967_v0  ;;  %860 = vmatprep.subr.bf16.mxu0 %v967_v0 }
   0x9   :  { %838 = vmatprep.mubr.msk.bf16.mxu0 %vm61_vm1, %v917_v50 }
   0xa   :  { %847 = vmatmul.mubr.bf16.vlgmr.msra.gmra.mrb[0].mxu1 %v969_v6 }
   0xb   :  { %851 = vmatpush3.bf16.msra.mxu1 %v1007_v2  ;;  %854 = vmatprep.mubr.msk.bf16.mxu1 %vm968_vm0, %v967_v0 }
   0xc   :  { %852 = vmatprep.subr.bf16.mxu1 %v967_v0  ;;  %861 = vmatpush3.bf16.msra.mxu0 %v1021_v5 }
   0xd   :  { %874 = vmatprep.subr.bf16.mxu0 %v967_v0 }
   0xe   :  { %839 = vmatmul.mubr.msk.bf16.gmra.mrb[4].mxu0 %vm61_vm1, %v918_v51 }
   0xf   :  { %853 = vmatpush3.bf16.msra.mxu1 %v1021_v5  ;;  %862 = vmatprep.mubr.msk.bf16.mxu0 %vm968_vm0, %v967_v0 }
  0x10   :  { %866 = vmatprep.subr.bf16.mxu1 %v967_v0 }
  0xd9   :  { %v1042_v8 = vpop.f32.mrb[0].mxu0 }
  0xda   :  { %v108_v9 = vpop.f32.mrb[1].mxu0  ;;  %v117_v61 = vadd.f32 %v1042_v8, %v1040_v7 }
  0xdb   :  { %v109_v10 = vadd.f32 %v1040_v7, %v108_v9  ;;  %v1045_v11 = vpop.f32.mrb[2].mxu0 }
  0xdc   :  { %v111_v12 = vpop.f32.mrb[3].mxu0 }
  0xdd   :  { %v193_v13 = vpop.f32.mrb[0].mxu1  ;;  %v112_v33 = vadd.f32 %v1040_v7, %v111_v12 }
  0xde   :  { %v199_v14 = vadd.f32 %v193_v13, %v109_v10  ;;  %v848_v15 = vpop.f32.mrb[1].mxu1 }
  0xdf   :  { %v196_v16 = vpop.f32.mrb[2].mxu1 }
  0xe0   :  { %v200_v17 = vmul.f32 0.5, %v199_v14  ;;  %919 = vtanh.f32 %v199_v14  ;;  %v849_v18 = vpop.f32.mrb[3].mxu1 }
  0xe1   :  { %v1083_v56 = vpop.f32.mrb[4].mxu0 }
  0xe2   :  { %921 = vtanh.f32 %v200_v17  ;;  %v1085_v57 = vpop.f32.mrb[5].mxu0 }
  0xe3   :  { %v1087_v58 = vpop.f32.mrb[6].mxu0 }
  0xe4   :  { %v1089_v59 = vpop.f32.mrb[7].mxu0 }
  0xea   :  { %v920_v19 = vpop.eup %919 }
  0xeb   :  { %206 = vrot.lane.b32.xlu0 %v920_v19, %s970_s25 }
  0xec   :  { %v922_v20 = vpop.eup %921 }
  0xed   :  { %v202_v21 = vadd.f32 1.0, %v922_v20 }
  0xef   :  { %v203_v22 = vmul.f32 0.5, %v202_v21 }
  0xf1   :  { %v210_v23 = vmul.f32 0.0, %v203_v22 }
  0xf3   :  { %212 = vrot.lane.b32.xlu0 %v210_v23, %s971_s2 }
 0x15d   :  { %v207_v24 = vpop.permute.xlu0 %206 }
 0x15e   :  { %v209_v25 = vmul.f32 %v207_v24, %v203_v22  ;;  %v120_v24 = vadd.f32 %v1045_v11, %v1040_v7 }
 0x165   :  { %v213_v26 = vpop.permute.xlu0 %212 }
 0x166   :  { %v215_v27 = vadd.f32 %v213_v26, %v209_v25 }
 0x168   :  { %923 = vtanh.f32 %v215_v27  ;;  %281 = vrot.lane.b32.xlu0 %v215_v27, %s972_s26 }
 0x172   :  { %v924_v28 = vpop.eup %923 }
 0x173   :  { %218 = vrot.lane.b32.xlu1 %v924_v28, %s971_s2 }
 0x1da   :  { %v282_v44 = vpop.permute.xlu0 %281 }
 0x1e5   :  { %v219_v29 = vpop.permute.xlu1 %218 }
 0x1e6   :  { %v1051_v30 = vmul.f32 %v219_v29, %v203_v22 }
 0x1e8   :  { %v222_v31 = vpack.c.bf16 %v1051_v30, %v1051_v30 }
 0x1ea   :  { %224 = vrot.lane.b32.xlu1 %v222_v31, %s970_s25 }
 0x25c   :  { %v225_v32 = vpop.permute.xlu1 %224 }
 0x25d   :  { %855 = vmatmul.mubr.msk.bf16.vlgmr.msra.gmra.mrb[4].mxu1 %vm155_vm2, %v225_v32 }
 0x25e   :  { %867 = vmatpush3.bf16.msra.mxu1 %v1007_v2  ;;  %870 = vmatprep.mubr.msk.bf16.mxu1 %vm968_vm0, %v967_v0 }
 0x25f   :  { %868 = vmatprep.subr.bf16.mxu1 %v967_v0 }
 0x262   :  { %869 = vmatpush3.bf16.msra.mxu1 %v1021_v5 }
 0x263   :  { %882 = vmatprep.subr.bf16.mxu1 %v967_v0 }
 0x330   :  { %v263_v34 = vpop.f32.mrb[4].mxu1 }
 0x331   :  { %v269_v35 = vadd.f32 %v263_v34, %v112_v33  ;;  %v856_v36 = vpop.f32.mrb[5].mxu1 }
 0x332   :  { %v266_v37 = vpop.f32.mrb[6].mxu1 }
 0x333   :  { %v270_v38 = vmul.f32 0.5, %v269_v35  ;;  %925 = vtanh.f32 %v269_v35  ;;  %v857_v39 = vpop.f32.mrb[7].mxu1 }
 0x335   :  { %927 = vtanh.f32 %v270_v38 }
 0x33d   :  { %v926_v40 = vpop.eup %925 }
 0x33e   :  { %276 = vrot.lane.b32.xlu1 %v926_v40, %s970_s25 }
 0x33f   :  { %v928_v41 = vpop.eup %927 }
 0x340   :  { %v272_v42 = vadd.f32 1.0, %v928_v41 }
 0x342   :  { %v273_v43 = vmul.f32 0.5, %v272_v42 }
 0x344   :  { %v284_v45 = vmul.f32 %v282_v44, %v273_v43 }
 0x346   :  { %286 = vrot.lane.b32.xlu0 %v284_v45, %s971_s2 }
 0x3b0   :  { %v277_v46 = vpop.permute.xlu1 %276 }
 0x3b1   :  { %v279_v47 = vmul.f32 %v277_v46, %v273_v43  ;;  %v125_v46 = vadd.f32 %v1040_v7, %v1085_v57 }
 0x3b8   :  { %v287_v48 = vpop.permute.xlu0 %286 }
 0x3b9   :  { %v289_v49 = vadd.f32 %v287_v48, %v279_v47 }
 0x3bb   :  { %929 = vtanh.f32 %v289_v49 }
 0x3c5   :  { %v930_v52 = vpop.eup %929 }
 0x3c6   :  { %292 = vrot.lane.b32.xlu1 %v930_v52, %s971_s2 }
 0x3ca   :  { %355 = vrot.lane.b32.xlu1 %v289_v49, %s972_s26 }
 0x438   :  { %v293_v53 = vpop.permute.xlu1 %292 }
 0x439   :  { %v1078_v54 = vmul.f32 %v293_v53, %v273_v43 }
 0x43b   :  { %v296_v55 = vpack.c.bf16 %v1078_v54, %v1078_v54 }
 0x43c   :  { %v356_v14 = vpop.permute.xlu1 %355 }
 0x43d   :  { %298 = vrot.lane.b32.xlu0 %v296_v55, %s970_s25 }
 0x4af   :  { %v299_v60 = vpop.permute.xlu0 %298 }
 0x4b0   :  { %863 = vmatmul.mubr.msk.bf16.vlgmr.msra.gmra.mrb[8].mxu0 %vm155_vm2, %v299_v60 }
 0x4b1   :  { %875 = vmatpush3.bf16.msra.mxu0 %v1007_v2  ;;  %878 = vmatprep.mubr.msk.bf16.mxu0 %vm968_vm0, %v967_v0 }
 0x4b2   :  { %876 = vmatprep.subr.bf16.mxu0 %v967_v0 }
 0x4b5   :  { %877 = vmatpush3.bf16.msra.mxu0 %v1021_v5 }
 0x4b6   :  { %890 = vmatprep.subr.bf16.mxu0 %v967_v0 }
 0x583   :  { %v337_v62 = vpop.f32.mrb[8].mxu0 }
 0x584   :  { %v343_v63 = vadd.f32 %v337_v62, %v117_v61  ;;  %v864_v1 = vpop.f32.mrb[9].mxu0 }
 0x585   :  { %v340_v3 = vpop.f32.mrb[10].mxu0 }
 0x586   :  { %v344_v4 = vmul.f32 0.5, %v343_v63  ;;  %931 = vtanh.f32 %v343_v63  ;;  %v865_v6 = vpop.f32.mrb[11].mxu0 }
 0x588   :  { %933 = vtanh.f32 %v344_v4 }
 0x590   :  { %v932_v9 = vpop.eup %931 }
 0x591   :  { %350 = vrot.lane.b32.xlu0 %v932_v9, %s970_s25 }
 0x592   :  { %v934_v10 = vpop.eup %933 }
 0x593   :  { %v346_v12 = vadd.f32 1.0, %v934_v10 }
 0x595   :  { %v347_v13 = vmul.f32 0.5, %v346_v12 }
 0x597   :  { %v358_v15 = vmul.f32 %v356_v14, %v347_v13  ;;  %v128_v14 = vadd.f32 %v1040_v7, %v1089_v59 }
 0x599   :  { %360 = vrot.lane.b32.xlu1 %v358_v15, %s971_s2 }
 0x603   :  { %v351_v16 = vpop.permute.xlu0 %350 }
 0x604   :  { %v353_v8 = vmul.f32 %v351_v16, %v347_v13 }
 0x60b   :  { %v361_v17 = vpop.permute.xlu1 %360 }
 0x60c   :  { %v363_v18 = vadd.f32 %v361_v17, %v353_v8 }
 0x60e   :  { %935 = vtanh.f32 %v363_v18 }
 0x618   :  { %v936_v19 = vpop.eup %935 }
 0x619   :  { %366 = vrot.lane.b32.xlu0 %v936_v19, %s971_s2 }
 0x61d   :  { %429 = vrot.lane.b32.xlu0 %v363_v18, %s972_s26 }
 0x68b   :  { %v367_v20 = vpop.permute.xlu0 %366 }
 0x68c   :  { %v1104_v21 = vmul.f32 %v367_v20, %v347_v13 }
 0x68e   :  { %v370_v22 = vpack.c.bf16 %v1104_v21, %v1104_v21 }
 0x68f   :  { %v430_v36 = vpop.permute.xlu0 %429 }
 0x690   :  { %372 = vrot.lane.b32.xlu1 %v370_v22, %s970_s25 }
 0x702   :  { %v373_v23 = vpop.permute.xlu1 %372 }
 0x703   :  { %871 = vmatmul.mubr.msk.bf16.vlgmr.msra.gmra.mrb[8].mxu1 %vm155_vm2, %v373_v23 }
 0x704   :  { %883 = vmatpush3.bf16.msra.mxu1 %v1007_v2  ;;  %886 = vmatprep.mubr.msk.bf16.mxu1 %vm968_vm0, %v967_v0 }
 0x705   :  { %884 = vmatprep.subr.bf16.mxu1 %v967_v0 }
 0x708   :  { %885 = vmatpush3.bf16.msra.mxu1 %v1021_v5 }
 0x709   :  { %898 = vmatprep.subr.bf16.mxu1 %v967_v0 }
 0x7d6   :  { %v411_v25 = vpop.f32.mrb[8].mxu1 }
 0x7d7   :  { %v417_v26 = vadd.f32 %v411_v25, %v120_v24  ;;  %v872_v27 = vpop.f32.mrb[9].mxu1 }
 0x7d8   :  { %v414_v28 = vpop.f32.mrb[10].mxu1 }
 0x7d9   :  { %v418_v29 = vmul.f32 0.5, %v417_v26  ;;  %937 = vtanh.f32 %v417_v26  ;;  %v873_v31 = vpop.f32.mrb[11].mxu1 }
 0x7db   :  { %939 = vtanh.f32 %v418_v29 }
 0x7e3   :  { %v938_v32 = vpop.eup %937 }
 0x7e4   :  { %424 = vrot.lane.b32.xlu1 %v938_v32, %s970_s25 }
 0x7e5   :  { %v940_v33 = vpop.eup %939 }
 0x7e6   :  { %v420_v34 = vadd.f32 1.0, %v940_v33  ;;  %v133_v33 = vadd.f32 %v1083_v56, %v1040_v7 }
 0x7e8   :  { %v421_v35 = vmul.f32 0.5, %v420_v34 }
 0x7ea   :  { %v432_v37 = vmul.f32 %v430_v36, %v421_v35 }
 0x7ec   :  { %434 = vrot.lane.b32.xlu0 %v432_v37, %s971_s2 }
 0x856   :  { %v425_v38 = vpop.permute.xlu1 %424 }
 0x857   :  { %v427_v11 = vmul.f32 %v425_v38, %v421_v35 }
 0x85e   :  { %v435_v39 = vpop.permute.xlu0 %434 }
 0x85f   :  { %v437_v40 = vadd.f32 %v435_v39, %v427_v11 }
 0x861   :  { %941 = vtanh.f32 %v437_v40 }
 0x86b   :  { %v942_v41 = vpop.eup %941 }
 0x86c   :  { %440 = vrot.lane.b32.xlu1 %v942_v41, %s971_s2 }
 0x870   :  { %503 = vrot.lane.b32.xlu1 %v437_v40, %s972_s26 }
 0x8de   :  { %v441_v42 = vpop.permute.xlu1 %440 }
 0x8df   :  { %v1122_v43 = vmul.f32 %v441_v42, %v421_v35 }
 0x8e1   :  { %v444_v44 = vpack.c.bf16 %v1122_v43, %v1122_v43 }
 0x8e2   :  { %v504_v62 = vpop.permute.xlu1 %503 }
 0x8e3   :  { %446 = vrot.lane.b32.xlu0 %v444_v44, %s970_s25 }
 0x955   :  { %v447_v45 = vpop.permute.xlu0 %446 }
 0x956   :  { %879 = vmatmul.mubr.msk.bf16.vlgmr.msra.gmra.mrb[12].mxu0 %vm155_vm2, %v447_v45 }
 0x957   :  { %891 = vmatpush3.bf16.msra.mxu0 %v1007_v2  ;;  %894 = vmatprep.mubr.msk.bf16.mxu0 %vm968_vm0, %v967_v0 }
 0x958   :  { %892 = vmatprep.subr.bf16.mxu0 %v967_v0 }
 0x95b   :  { %893 = vmatpush3.bf16.msra.mxu0 %v1021_v5 }
 0xa29   :  { %v485_v47 = vpop.f32.mrb[12].mxu0 }
 0xa2a   :  { %v491_v48 = vadd.f32 %v485_v47, %v125_v46  ;;  %v880_v49 = vpop.f32.mrb[13].mxu0 }
 0xa2b   :  { %v488_v50 = vpop.f32.mrb[14].mxu0 }
 0xa2c   :  { %v492_v51 = vmul.f32 0.5, %v491_v48  ;;  %943 = vtanh.f32 %v491_v48  ;;  %v881_v52 = vpop.f32.mrb[15].mxu0 }
 0xa2e   :  { %945 = vtanh.f32 %v492_v51 }
 0xa36   :  { %v944_v53 = vpop.eup %943 }
 0xa37   :  { %498 = vrot.lane.b32.xlu0 %v944_v53, %s970_s25 }
 0xa38   :  { %v946_v55 = vpop.eup %945 }
 0xa39   :  { %v494_v60 = vadd.f32 1.0, %v946_v55  ;;  %v136_v55 = vadd.f32 %v1087_v58, %v1040_v7 }
 0xa3b   :  { %v495_v61 = vmul.f32 0.5, %v494_v60 }
 0xa3d   :  { %v506_v63 = vmul.f32 %v504_v62, %v495_v61 }
 0xa3f   :  { %508 = vrot.lane.b32.xlu1 %v506_v63, %s971_s2 }
 0xaa9   :  { %v499_v1 = vpop.permute.xlu0 %498 }
 0xaaa   :  { %v501_v57 = vmul.f32 %v499_v1, %v495_v61 }
 0xab1   :  { %v509_v3 = vpop.permute.xlu1 %508 }
 0xab2   :  { %v511_v4 = vadd.f32 %v509_v3, %v501_v57 }
 0xab4   :  { %947 = vtanh.f32 %v511_v4 }
 0xabe   :  { %v948_v6 = vpop.eup %947 }
 0xabf   :  { %514 = vrot.lane.b32.xlu0 %v948_v6, %s971_s2 }
 0xac3   :  { %577 = vrot.lane.b32.xlu0 %v511_v4, %s972_s26 }
 0xb31   :  { %v515_v9 = vpop.permute.xlu0 %514 }
 0xb32   :  { %v1139_v10 = vmul.f32 %v515_v9, %v495_v61 }
 0xb34   :  { %v518_v12 = vpack.c.bf16 %v1139_v10, %v1139_v10 }
 0xb36   :  { %520 = vrot.lane.b32.xlu1 %v518_v12, %s970_s25 }
 0xba8   :  { %v521_v13 = vpop.permute.xlu1 %520 }
 0xba9   :  { %887 = vmatmul.mubr.msk.bf16.vlgmr.msra.gmra.mrb[12].mxu1 %vm155_vm2, %v521_v13 }
 0xbaa   :  { %899 = vmatpush3.bf16.msra.mxu1 %v1007_v2  ;;  %902 = vmatprep.mubr.msk.bf16.mxu1 %vm968_vm0, %v967_v0 }
 0xbab   :  { %900 = vmatprep.subr.bf16.mxu1 %v967_v0  ;;  %v578_v0 = vpop.permute.xlu0 %577 }
 0xbae   :  { %901 = vmatpush3.bf16.msra.mxu1 %v1021_v5 }
 0xc7c   :  { %v559_v15 = vpop.f32.mrb[12].mxu1 }
 0xc7d   :  { %v565_v16 = vadd.f32 %v559_v15, %v128_v14  ;;  %v888_v8 = vpop.f32.mrb[13].mxu1 }
 0xc7e   :  { %v562_v17 = vpop.f32.mrb[14].mxu1 }
 0xc7f   :  { %v566_v18 = vmul.f32 0.5, %v565_v16  ;;  %949 = vtanh.f32 %v565_v16  ;;  %v889_v19 = vpop.f32.mrb[15].mxu1 }
 0xc81   :  { %951 = vtanh.f32 %v566_v18 }
 0xc89   :  { %v950_v20 = vpop.eup %949 }
 0xc8a   :  { %572 = vrot.lane.b32.xlu1 %v950_v20, %s970_s25 }
 0xc8b   :  { %v952_v2 = vpop.eup %951 }
 0xc8c   :  { %v568_v22 = vadd.f32 1.0, %v952_v2 }
 0xc8e   :  { %v569_v23 = vmul.f32 0.5, %v568_v22 }
 0xc90   :  { %v580_v24 = vmul.f32 %v578_v0, %v569_v23 }
 0xc92   :  { %582 = vrot.lane.b32.xlu0 %v580_v24, %s971_s2 }
 0xcfc   :  { %v573_v5 = vpop.permute.xlu1 %572 }
 0xcfd   :  { %v575_v59 = vmul.f32 %v573_v5, %v569_v23 }
 0xd04   :  { %v583_v25 = vpop.permute.xlu0 %582 }
 0xd05   :  { %v585_v26 = vadd.f32 %v583_v25, %v575_v59 }
 0xd07   :  { %953 = vtanh.f32 %v585_v26 }
 0xd11   :  { %v954_v27 = vpop.eup %953 }
 0xd12   :  { %588 = vrot.lane.b32.xlu1 %v954_v27, %s971_s2 }
 0xd16   :  { %651 = vrot.lane.b32.xlu1 %v585_v26, %s972_s26 }
 0xd84   :  { %v589_v28 = vpop.permute.xlu1 %588 }
 0xd85   :  { %v1156_v29 = vmul.f32 %v589_v28, %v569_v23 }
 0xd87   :  { %v592_v31 = vpack.c.bf16 %v1156_v29, %v1156_v29 }
 0xd88   :  { %v652_v44 = vpop.permute.xlu1 %651 }
 0xd89   :  { %594 = vrot.lane.b32.xlu0 %v592_v31, %s970_s25 }
 0xdfb   :  { %v595_v32 = vpop.permute.xlu0 %594 }
 0xdfc   :  { %895 = vmatmul.mubr.msk.bf16.vlgmr.msra.gmra.mrb[16].mxu0 %vm155_vm2, %v595_v32 }
 0xecf   :  { %v633_v34 = vpop.f32.mrb[16].mxu0 }
 0xed0   :  { %v639_v35 = vadd.f32 %v633_v34, %v133_v33  ;;  %v896_v36 = vpop.f32.mrb[17].mxu0 }
 0xed1   :  { %v636_v37 = vpop.f32.mrb[18].mxu0 }
 0xed2   :  { %v640_v38 = vmul.f32 0.5, %v639_v35  ;;  %955 = vtanh.f32 %v639_v35  ;;  %v897_v11 = vpop.f32.mrb[19].mxu0 }
 0xed4   :  { %957 = vtanh.f32 %v640_v38 }
 0xedc   :  { %v956_v39 = vpop.eup %955 }
 0xedd   :  { %646 = vrot.lane.b32.xlu0 %v956_v39, %s970_s25 }
 0xede   :  { %v958_v40 = vpop.eup %957 }
 0xedf   :  { %v642_v41 = vadd.f32 1.0, %v958_v40 }
 0xee1   :  { %v643_v42 = vmul.f32 0.5, %v642_v41 }
 0xee3   :  { %v654_v45 = vmul.f32 %v652_v44, %v643_v42 }
 0xee5   :  { %656 = vrot.lane.b32.xlu1 %v654_v45, %s971_s2 }
 0xf4f   :  { %v647_v46 = vpop.permute.xlu0 %646 }
 0xf50   :  { %v649_v56 = vmul.f32 %v647_v46, %v643_v42 }
 0xf57   :  { %v657_v47 = vpop.permute.xlu1 %656 }
 0xf58   :  { %v659_v48 = vadd.f32 %v657_v47, %v649_v56 }
 0xf5a   :  { %959 = vtanh.f32 %v659_v48 }
 0xf64   :  { %v960_v49 = vpop.eup %959 }
 0xf65   :  { %662 = vrot.lane.b32.xlu0 %v960_v49, %s971_s2 }
 0xf69   :  { %725 = vrot.lane.b32.xlu0 %v659_v48, %s972_s26 }
 0xfd7   :  { %v663_v50 = vpop.permute.xlu0 %662 }
 0xfd8   :  { %v665_v51 = vmul.f32 %v663_v50, %v643_v42 }
 0xfda   :  { %v666_v52 = vpack.c.bf16 %v665_v51, %v665_v51 }
 0xfdb   :  { %v726_v12 = vpop.permute.xlu0 %725 }
 0xfdc   :  { %668 = vrot.lane.b32.xlu1 %v666_v52, %s970_s25 }
0x104e   :  { %v669_v53 = vpop.permute.xlu1 %668 }
0x104f   :  { %903 = vmatmul.mubr.msk.bf16.vlgmr.msra.gmra.mrb[16].mxu1 %vm155_vm2, %v669_v53 }
0x1122   :  { %v707_v60 = vpop.f32.mrb[16].mxu1 }
0x1123   :  { %v713_v61 = vadd.f32 %v707_v60, %v136_v55  ;;  %v904_v62 = vpop.f32.mrb[17].mxu1 }
0x1124   :  { %v710_v63 = vpop.f32.mrb[18].mxu1 }
0x1125   :  { %v714_v1 = vmul.f32 0.5, %v713_v61  ;;  %961 = vtanh.f32 %v713_v61  ;;  %v905_v57 = vpop.f32.mrb[19].mxu1 }
0x1127   :  { %963 = vtanh.f32 %v714_v1 }
0x112f   :  { %v962_v3 = vpop.eup %961 }
0x1130   :  { %720 = vrot.lane.b32.xlu1 %v962_v3, %s970_s25 }
0x1131   :  { %v964_v4 = vpop.eup %963 }
0x1132   :  { %v716_v6 = vadd.f32 1.0, %v964_v4 }
0x1134   :  { %v717_v9 = vmul.f32 0.5, %v716_v6 }
0x1136   :  { %v728_v13 = vmul.f32 %v726_v12, %v717_v9 }
0x1138   :  { %730 = vrot.lane.b32.xlu0 %v728_v13, %s971_s2 }
0x113c   :  { %748 = vrot.lane.b32.xlu0 %v1051_v30, %s970_s25 }
0x1140   :  { %752 = vrot.lane.b32.xlu0 %v1104_v21, %s970_s25 }
0x1144   :  { %756 = vrot.lane.b32.xlu0 %v1139_v10, %s970_s25 }
0x1148   :  { %760 = vrot.lane.b32.xlu0 %v665_v51, %s970_s25 }
0x11a2   :  { %v721_v7 = vpop.permute.xlu1 %720 }
0x11a3   :  { %v723_v58 = vmul.f32 %v721_v7, %v717_v9 }
0x11aa   :  { %v731_v14 = vpop.permute.xlu0 %730 }
0x11ab   :  { %v733_v15 = vadd.f32 %v731_v14, %v723_v58 }
0x11ad   :  { %965 = vtanh.f32 %v733_v15 }
0x11ae   :  { %v749_v16 = vpop.permute.xlu0 %748 }
0x11af   :  { %772 = vst.msk [vmem:[%s1225_s4] sm:$0xff] %vm155_vm2, %v749_v16 }
0x11b2   :  { %v753_v30 = vpop.permute.xlu0 %752 }
0x11b3   :  { %774 = vst.msk [vmem:[%s1225_s4 + $0x10] sm:$0xff] %vm155_vm2, %v753_v30 }
0x11b6   :  { %v757_v21 = vpop.permute.xlu0 %756 }
0x11b7   :  { %v966_v10 = vpop.eup %965  ;;  %776 = vst.msk [vmem:[%s1225_s4 + $0x20] sm:$0xff] %vm155_vm2, %v757_v21 }
0x11b8   :  { %736 = vrot.lane.b32.xlu1 %v966_v10, %s971_s2 }
0x11ba   :  { %v761_v8 = vpop.permute.xlu0 %760 }
0x11bb   :  { %778 = vst.msk [vmem:[%s1225_s4 + $0x30] sm:$0xff] %vm155_vm2, %v761_v8 }
0x11bc   :  { %750 = vrot.lane.b32.xlu1 %v1078_v54, %s970_s25 }
0x11c0   :  { %754 = vrot.lane.b32.xlu1 %v1122_v43, %s970_s25 }
0x11c4   :  { %758 = vrot.lane.b32.xlu1 %v1156_v29, %s970_s25 }
0x122a   :  { %v737_v17 = vpop.permute.xlu1 %736 }
0x122b   :  { %v739_v18 = vmul.f32 %v737_v17, %v717_v9 }
0x122d   :  { %762 = vrot.lane.b32.xlu1 %v739_v18, %s970_s25 }
0x122e   :  { %v751_v19 = vpop.permute.xlu1 %750 }
0x122f   :  { %773 = vst.msk [vmem:[%s1225_s4 + $0x8] sm:$0xff] %vm155_vm2, %v751_v19 }
0x1232   :  { %v755_v20 = vpop.permute.xlu1 %754 }
0x1233   :  { %775 = vst.msk [vmem:[%s1225_s4 + $0x18] sm:$0xff] %vm155_vm2, %v755_v20 }
0x1236   :  { %v759_v54 = vpop.permute.xlu1 %758 }
0x1237   :  { %777 = vst.msk [vmem:[%s1225_s4 + $0x28] sm:$0xff] %vm155_vm2, %v759_v54 }
0x129f   :  { %v763_v43 = vpop.permute.xlu1 %762 }
0x12a0   :  { %779 = vst.msk [vmem:[%s1225_s4 + $0x38] sm:$0xff] %vm155_vm2, %v763_v43 }

</bundles_post_ra>
